<compile_context>
chip_gen: v6e
topology: v6e:2x2x1
jax: 0.10.0
libtpu: 0.0.40
codegen_flags: <defaults>
</compile_context>

<pallas_src>
import jax
import jax.numpy as jnp
from jax.experimental import pallas as pl
from jax.experimental.pallas import tpu as pltpu


def _mlp_kernel(x_ref, w1_ref, w2_ref, o_ref):
    # x_ref:  (1, C_in,  TS)  spatial tile of one sample (lane-dense last dim)
    # w1_ref: (C_hid, C_in)   full conv1 weight (squeezed 1x1x1 kernel)
    # w2_ref: (C_out, C_hid)  full conv2 weight
    # o_ref:  (1, C_out, TS)
    x = x_ref[0, :, :]                                              # (C_in, TS)
    h = jnp.dot(w1_ref[...], x, preferred_element_type=jnp.float32)
    h = jnp.maximum(h, 0.0)                                         # ReLU (VPU, f32)
    y = jnp.dot(w2_ref[...], h, preferred_element_type=jnp.float32)
    o_ref[0, :, :] = y.astype(o_ref.dtype)


def _bytes_per_spatial_elem(C_in, C_hid, C_out, itemsize=4):
    # Double-buffered input + output tiles plus compute temporaries (x, h, y) per S element.
    return itemsize * (2 * C_in + 2 * C_out + (C_in + C_hid + C_out))


def _pick_tile_s(S, C_in, C_hid, C_out, vmem_budget_bytes, max_tile_s):
    """Largest 128-multiple divisor of S under the VMEM budget (and max_tile_s cap).

    If S is not a multiple of 128, fall back to a single full-extent block
    (block_shape == full array dim is always legal), so no padding is ever needed.
    """
    if S % 128 != 0:
        return S
    bps = _bytes_per_spatial_elem(C_in, C_hid, C_out)
    cap = min(S, max_tile_s, max(128, vmem_budget_bytes // bps))
    best = 128
    for cand in range(128, cap + 1, 128):
        if S % cand == 0:
            best = cand
    return best


def mlp_pallas(x_ncdhw, w1, w2, *, max_tile_s=32768, vmem_budget_bytes=12 << 20):
    """Fused 1x1x1-Conv3d -> ReLU -> 1x1x1-Conv3d (both bias-free).

    x_ncdhw : (N, C_in, D, H, W) float32
    w1      : (C_hid, C_in)      conv1 weight squeezed from (C_hid, C_in, 1, 1, 1)
    w2      : (C_out, C_hid)     conv2 weight squeezed from (C_out, C_hid, 1, 1, 1)
    returns : (N, C_out, D, H, W)
    """
    N, C_in, D, H, W = x_ncdhw.shape
    C_hid = w1.shape[0]
    C_out = w2.shape[0]
    S = D * H * W

    # Pure reshape (no data movement): NCDHW -> (N, C_in, S).
    x = x_ncdhw.reshape(N, C_in, S)

    tile_s = _pick_tile_s(S, C_in, C_hid, C_out, vmem_budget_bytes, max_tile_s)
    grid = (N, S // tile_s)

    # If the (rare) full-extent fallback needs more than the default scoped VMEM,
    # ask for more explicitly (capped well under physical VMEM on all chips).
    est_vmem = _bytes_per_spatial_elem(C_in, C_hid, C_out) * tile_s
    vmem_limit = None
    if est_vmem > (14 << 20):
        vmem_limit = min(est_vmem + (4 << 20), 56 << 20)

    # TODO(synk): optionally carry activations in bfloat16 HBM<->VMEM (keep f32 dots)
    # for another ~2x HBM-traffic cut when accuracy allows; kept f32 to match PyTorch.
    out = pl.pallas_call(
        _mlp_kernel,
        out_shape=jax.ShapeDtypeStruct((N, C_out, S), x.dtype),
        grid_spec=pltpu.PrefetchScalarGridSpec(
            num_scalar_prefetch=0,
            grid=grid,
            in_specs=[
                pl.BlockSpec((1, C_in, tile_s), lambda n, s: (n, 0, s)),
                pl.BlockSpec((C_hid, C_in), lambda n, s: (0, 0)),
                pl.BlockSpec((C_out, C_hid), lambda n, s: (0, 0)),
            ],
            out_specs=pl.BlockSpec((1, C_out, tile_s), lambda n, s: (n, 0, s)),
        ),
        compiler_params=pltpu.CompilerParams(
            dimension_semantics=("parallel", "parallel"),
            vmem_limit_bytes=vmem_limit,
        ),
    )(x, w1, w2)

    # Pure reshape back to NCDHW.
    return out.reshape(N, C_out, D, H, W)


if __name__ == "__main__":
    # Module config: in_channels=8, out_channels=8, reduction_ratio=2 -> hidden=4
    N, C_in, D, H, W = 2, 8, 4, 8, 8
    reduction_ratio = 2
    C_hid = C_in // reduction_ratio
    C_out = 8

    key = jax.random.PRNGKey(0)
    kx, k1, k2 = jax.random.split(key, 3)

    x = jax.random.normal(kx, (N, C_in, D, H, W), dtype=jnp.float32)
    # Deterministic synthetic weights (conv weights squeezed from (out, in, 1, 1, 1)).
    w1 = jax.random.normal(k1, (C_hid, C_in), dtype=jnp.float32) * 0.1
    w2 = jax.random.normal(k2, (C_out, C_hid), dtype=jnp.float32) * 0.1

    y = mlp_pallas(x, w1, w2)
    y = jax.block_until_ready(y)

    # Pure-JAX reference (same math as Conv3d 1x1x1 -> ReLU -> Conv3d 1x1x1).
    h_ref = jnp.maximum(jnp.einsum("ncdhw,kc->nkdhw", x, w1), 0.0)
    y_ref = jnp.einsum("ncdhw,kc->nkdhw", h_ref, w2)
    assert y.shape == (N, C_out, D, H, W)
    assert jnp.allclose(y, y_ref, atol=1e-5, rtol=1e-5)

    print("KERNEL_OK")
</pallas_src>

<mosaic_0001>
module attributes {stable_mosaic.version = 11 : i64} {
  func.func @_mlp_kernel(%arg0: i32, %arg1: i32, %arg2: memref<1x8x256xf32, #tpu.memory_space<vmem>>, %arg3: memref<4x8xf32, #tpu.memory_space<vmem>>, %arg4: memref<8x4xf32, #tpu.memory_space<vmem>>, %arg5: memref<1x8x256xf32, #tpu.memory_space<vmem>>) attributes {dimension_semantics = [#tpu.dimension_semantics<parallel>, #tpu.dimension_semantics<parallel>], iteration_bounds = array<i64: 2, 1>, scalar_prefetch = 0 : i64, scratch_operands = 0 : i64, tpu.core_type = #tpu.core_type<tc>, window_params = [{transform_indices = @transform_0, window_bounds = array<i64: 1, 8, 256>}, {pipeline_mode = #tpu.pipeline_mode<synchronous>, transform_indices = @transform_1, window_bounds = array<i64: 4, 8>}, {pipeline_mode = #tpu.pipeline_mode<synchronous>, transform_indices = @transform_2, window_bounds = array<i64: 8, 4>}, {transform_indices = @transform_3, window_bounds = array<i64: 1, 8, 256>}]} {
    %c0 = arith.constant 0 : index
    %c0_0 = arith.constant 0 : index
    %c0_1 = arith.constant 0 : index
    %0 = vector.load %arg2[%c0, %c0_0, %c0_1] : memref<1x8x256xf32, #tpu.memory_space<vmem>>, vector<1x8x256xf32>
    %1 = vector.shape_cast %0 : vector<1x8x256xf32> to vector<8x256xf32>
    %c0_2 = arith.constant 0 : index
    %c0_3 = arith.constant 0 : index
    %2 = vector.load %arg3[%c0_2, %c0_3] : memref<4x8xf32, #tpu.memory_space<vmem>>, vector<4x8xf32>
    %cst = arith.constant dense<0.000000e+00> : vector<4x256xf32>
    %3 = tpu.matmul %2, %1, %cst {dimension_numbers = #tpu.dot_dimension_numbers<[1], [0], [0], [1], [0, 0, 1, 1], [], []>} : vector<4x8xf32>, vector<8x256xf32>, vector<4x256xf32> -> vector<4x256xf32>
    %cst_4 = arith.constant 0.000000e+00 : f32
    %4 = vector.broadcast %cst_4 : f32 to vector<4x256xf32>
    %5 = arith.maximumf %3, %4 : vector<4x256xf32>
    %c0_5 = arith.constant 0 : index
    %c0_6 = arith.constant 0 : index
    %6 = vector.load %arg4[%c0_5, %c0_6] : memref<8x4xf32, #tpu.memory_space<vmem>>, vector<8x4xf32>
    %cst_7 = arith.constant dense<0.000000e+00> : vector<8x256xf32>
    %7 = tpu.matmul %6, %5, %cst_7 {dimension_numbers = #tpu.dot_dimension_numbers<[1], [0], [0], [1], [0, 0, 1, 1], [], []>} : vector<8x4xf32>, vector<4x256xf32>, vector<8x256xf32> -> vector<8x256xf32>
    %c0_8 = arith.constant 0 : index
    %c0_9 = arith.constant 0 : index
    %c0_10 = arith.constant 0 : index
    %8 = vector.load %arg5[%c0_8, %c0_9, %c0_10] : memref<1x8x256xf32, #tpu.memory_space<vmem>>, vector<1x8x256xf32>
    %9 = vector.shape_cast %8 : vector<1x8x256xf32> to vector<8x256xf32>
    %10 = vector.shape_cast %7 : vector<8x256xf32> to vector<1x8x256xf32>
    tpu.vector_store %arg5[%c0_8, %c0_9, %c0_10], %10 {strides = array<i32>} : memref<1x8x256xf32, #tpu.memory_space<vmem>>, vector<1x8x256xf32>,
    return
  }
  func.func @transform_0(%arg0: i32, %arg1: i32) -> (i32, i32, i32) {
    %c0_i32 = arith.constant 0 : i32
    %c0_i32_0 = arith.constant 0 : i32
    return %arg0, %c0_i32, %arg1 : i32, i32, i32
  }
  func.func @transform_1(%arg0: i32, %arg1: i32) -> (i32, i32) {
    %c0_i32 = arith.constant 0 : i32
    %c0_i32_0 = arith.constant 0 : i32
    %c0_i32_1 = arith.constant 0 : i32
    return %c0_i32, %c0_i32_0 : i32, i32
  }
  func.func @transform_2(%arg0: i32, %arg1: i32) -> (i32, i32) {
    %c0_i32 = arith.constant 0 : i32
    %c0_i32_0 = arith.constant 0 : i32
    %c0_i32_1 = arith.constant 0 : i32
    return %c0_i32, %c0_i32_0 : i32, i32
  }
  func.func @transform_3(%arg0: i32, %arg1: i32) -> (i32, i32, i32) {
    %c0_i32 = arith.constant 0 : i32
    %c0_i32_0 = arith.constant 0 : i32
    return %arg0, %c0_i32, %arg1 : i32, i32, i32
  }
}

</mosaic_0001>

<bundles_post_ra>
// kernel: tpu_custom_call.1
= control target key start
LH: loop header
LB: loop body
LE: loop exit
PB: predicated region body
PF: predicated region fallthrough
CT: control target
= control target key end

     0   :  { %8 = vsyncpa [#allocation3], 0  ;;  %s836_s0 = inlined_call_operand.hbm [shape: f32[2,8,256], index: 0, kind: input, shape index: {}]   ;;  %s837_s1 = inlined_call_operand.vmem [shape: f32[4,8], index: 1, kind: input, shape index: {}]   ;;  %s838_s2 = inlined_call_operand.vmem [shape: f32[8,4], index: 2, kind: input, shape index: {}]   ;;  %s839_s3 = inlined_call_operand.hbm [shape: f32[2,8,256], index: 3, kind: output, shape index: {}]  }
   0x1   :  { %10 = vsyncpa [#allocation3 + $0x1], 0 }
   0x2   :  { %11 = vsyncpa [#allocation4], 0 }
   0x3   :  { %13 = vsyncpa [#allocation4 + $0x1], 0  ;;  %s690_s12 = smov 0   ;;  %s692_s13 = smov 0  }
   0x4   :  { %s694_s14 = smov 0   ;;  %s696_s15 = smov 0  }
   0x5   :  { %s698_s16 = smov 0   ;;  %s700_s17 = smov 0  }
   0x6 LB: > { %s473_s18 = sadd.s32 4294967295, %s665_s17   ;;  %s474_s19 = sadd.s32 4294967294, %s665_s17   ;;  %s665_s17 = sphi %s700_s17, %s19_s17   ;;  %s661_s16 = sphi %s698_s16, %s851_s16   ;;  %s657_s15 = sphi %s696_s15, %s850_s15   ;;  %s653_s14 = sphi %s694_s14, %s849_s14   ;;  %s649_s13 = sphi %s692_s13, %s848_s13   ;;  %s645_s12 = sphi %s690_s12, %s847_s12  }
   0x7   : > { %s31_s20 = sadd.s32 1, %s661_s16  ;;  %s40_s21 = sadd.s32 1, %s653_s14 }
   0x8   : > { %p33_p0 = scmp.ge.s32.totalorder %s31_s20, 2  ;;  %p47_p1 = scmp.ne.s32.totalorder %s653_s14, %s649_s13 }
   0x9   : > { %p48_p2 = scmp.eq.s32.totalorder %s665_s17, 0  ;;  %p53_p3 = scmp.ne.s32.totalorder %s649_s13, %s645_s12 }
   0xa   : > { %s853_s20 = smov (%p33_p0, %s31_s20), 0  ;;  %p54_p5 = scmp.eq.s32.totalorder %s473_s18, 0 }
   0xb   : > { %p731_p4 = por %p48_p2, %p47_p1  ;;  %s35_s23 = ssub.s32 %s661_s16, %s853_s20 }
   0xc   : > { %p121_p6 = scmp.eq.s32.totalorder %s473_s18, 1  ;;  %p38_p7 = scmp.eq.s32.totalorder %s35_s23, 0 }
   0xd   : > { %p737_p8 = por %p54_p5, %p53_p3  ;;  %p127_p10 = scmp.eq.s32.totalorder %s474_s19, 1 }
   0xe   : > { %p741_p9 = por %p121_p6, %p47_p1  ;;  %p506_p13 = scmp.lt.s32.totalorder %s665_s17, 2 }
   0xf   : > { %s746_s26 = scalar_select %p38_p7, %s653_s14, %s40_s21  }
  0x10   : > { %p748_p11 = por %p127_p10, %p53_p3  ;;  %s153_s28 = sand.u32 1, %s653_s14  }
  0x11   : > { %s477_s29 = sshll.u32 %s153_s28, 4  ;;  %s492_s30 = sshll.u32 %s661_s16, 8 }
  0x12   : > { %s843_s27 = scalar_select %p748_p11, 1, 0 }
  0x13   : > { %s165_s6 = scalar_lea.hbm %s836_s0, %s492_s30  ;;  %s157_s7 = scalar_lea.vmem [#allocation2], %s477_s29 }
  0x14   : > { %s167_s8 = sshll.u32 %s157_s7, 4  ;;  %p761_p0 = pnand %p506_p13, %p731_p4  ;;  %s168_s8 = int_to_ptr.vmem [resolvable:$true] %s167_s8 }
  0x15   : > { %p480_p1 = scmp.ge.s32.totalorder %s665_s17, 1  ;;  %p172_p2 = scmp.lt.s32.totalorder %s665_s17, 3 }
  0x16   : > { %s154_s10 = scalar_lea.sflag [#allocation3], %s153_s28  ;;  %p559_p3 = pneg %p761_p0 }
  0x17   : > { %s570_s11 = scalar_lea.vmem %s168_s8, 256  ;;  %s667_s18 = smov [#allocation2]  }
  0x18   : > { %p571_p5 = scmp.ne.s32.totalorder %s168_s8, %s570_s11  ;;  %s575_s19 = sshll.u32 %s667_s18, 4  ;;  %s576_s19 = int_to_ptr.vmem [resolvable:$false] %s575_s19 }
  0x19   : > { %s577_s21 = scalar_lea.vmem %s576_s19, 512  ;;  %p578_p10 = scmp.lt.s32.totalorder %s168_s8, %s576_s19 }
  0x1a   : > { %p573_p6 = pnand %p571_p5, %p559_p3  ;;  %p579_p12 = scmp.lt.s32.totalorder %s577_s21, %s570_s11 }
  0x1c   : > { %p574_p7 = pneg %p573_p6  ;;  %p580_p4 = por %p579_p12, %p578_p10 }
  0x1e   : > { %p581_p13 = pnand %p580_p4, %p574_p7 }
  0x20   : > { %584 = shalt.err (!%p581_p13)
}
  0x21   : > { %501 = dma.hbm_to_vmem [thread:$0]  (!%p761_p0), %s165_s6, 256, %s168_s8, %s154_s10  }
  0x22   : > { %p173_p11 = pnand %p480_p1, %p172_p2 }
  0x23   : > { %s776_s22 = sand.u32 (!%p173_p11), 1, %s649_s13  }
  0x24   : > { %176 = sbr.rel (%p173_p11) target bundleno = 453 (0x1c5), region = 32  ;;  %s481_s23 = sshll.u32 (!%p173_p11), %s776_s22, 4 }
  0x25   : > { %s179_s28 = scalar_lea.sflag (!%p173_p11), [#allocation3], %s776_s22  ;;  %s182_s29 = scalar_lea.vmem (!%p173_p11), [#allocation2], %s481_s23 }
  0x29   : > { %636 = dma.done.wait (%p737_p8), %s179_s28, 256  }
  0x2a   : > { %638 = vsyncadd (%p737_p8), %s179_s28, 4294967040  ;;  %v668_v0 = vmov 0.0   ;;  %v208_v1 = vld [vmem:[%s182_s29 + $0x8] sm:$0xff]  ;;  %v207_v2 = vld [vmem:[%s182_s29] sm:$0xff]  ;;  %vm210_vm0 = vcmask 64512   ;;  %vm292_vm1 = vcmask 1043456  }
  0x2b   : > { %278 = vmatprep.mubr.f32.mxu0 %v668_v0  ;;  %363 = vmatprep.mubr.f32.mxu1 %v668_v0  ;;  %v209_v3 = vld [vmem:[%s837_s1] sm:$0xf]  ;;  %vm288_vm2 = vcmask 31744   ;;  %s204_s6 = scalar_lea.vmem [#allocation5], %s481_s23  ;;  %s493_s8 = sshll.u32 %s657_s15, 8 }
  0x2c   : > { %244 = vmatprep.subr.mxu0 %v208_v1  ;;  %v287_v8 = vld [vmem:[%s838_s2] sm:$0xff]  ;;  %s389_s7 = sshll.u32 %s204_s6, 4  ;;  %s387_s11 = scalar_lea.hbm %s839_s3, %s493_s8  ;;  %s791_s7 = int_to_ptr.vmem [resolvable:$true] %s389_s7 }
  0x2d   : > { %245 = vmatpush1.msra.mxu0 %v207_v2  ;;  %s373_s18 = scalar_lea.sflag [#allocation4], %s776_s22  ;;  %s585_s19 = scalar_lea.vmem %s791_s7, 256 }
  0x2e   : > { %483 = vmatmul.mubr.msk.f32.vlgmr.msra.gmra.mxu0 %vm210_vm0, %v209_v3  ;;  %p586_p8 = scmp.ne.s32.totalorder %s791_s7, %s585_s19  ;;  %s669_s15 = smov [#allocation5]  }
  0x2f   : > { %s589_s21 = sshll.u32 %s669_s15, 4  ;;  %s590_s21 = int_to_ptr.vmem [resolvable:$false] %s589_s21 }
  0x30   : > { %p587_p11 = pnand %p586_p8, %p741_p9  ;;  %s591_s23 = scalar_lea.vmem %s590_s21, 512 }
  0x31   : > { %p592_p0 = scmp.lt.s32.totalorder %s791_s7, %s590_s21  ;;  %p593_p1 = scmp.lt.s32.totalorder %s591_s23, %s585_s19 }
  0x32   : > { %p588_p12 = pneg %p587_p11 }
  0x33   : > { %p594_p2 = por %p593_p1, %p592_p0 }
  0x35   : > { %p595_p3 = pnand %p594_p2, %p588_p12 }
  0xee   : > { %v280_v4 = vpop.f32.mrf.mxu0 }
  0xef   : > { %v285_v7 = vmax.f32 %v280_v4, 0.0 }
  0xf0   : > { %v282_v5 = vpop.f32.mrf.mxu0 }
  0xf1   : > { %v286_v6 = vmax.f32 %v282_v5, 0.0 }
  0xf3   : > { %484 = vmatprep.subr.msk.mxu1 %vm292_vm1, %v286_v6 }
  0xf4   : > { %485 = vmatpush1.msk.msra.mxu1 %vm292_vm1, %v285_v7 }
  0xf5   : > { %486 = vmatmul.mubr.msk.f32.vlgmr.msra.gmra.mxu1 %vm288_vm2, %v287_v8 }
 0x1b5   : > { %v365_v9 = vpop.f32.mrf.mxu1 }
 0x1b6   : > { %370 = vst [vmem:[%s204_s6] sm:$0xff] %v365_v9 }
 0x1b7   : > { %v367_v10 = vpop.f32.mrf.mxu1 }
 0x1b8   : > { %371 = vst [vmem:[%s204_s6 + $0x8] sm:$0xff] %v367_v10 }
 0x1b9   : > { %598 = shalt.err (!%p595_p3)
}
 0x1ba   : > { %s599_s28 = scalar_lea.hbm %s387_s11, 256  ;;  %s603_s30 = scalar_lea.hbm %s839_s3, 512 }
 0x1bb   : > { %p600_p5 = scmp.ne.s32.totalorder %s387_s11, %s599_s28  ;;  %p604_p10 = scmp.lt.s32.totalorder %s387_s11, %s839_s3 }
 0x1bc   : > { %p605_p4 = scmp.lt.s32.totalorder %s603_s30, %s599_s28 }
 0x1bd   : > { %p601_p6 = pnand %p600_p5, %p741_p9 }
 0x1be   : > { %p606_p13 = por %p605_p4, %p604_p10 }
 0x1bf   : > { %p602_p7 = pneg %p601_p6 }
 0x1c1   : > { %p607_p8 = pnand %p606_p13, %p602_p7 }
 0x1c3   : > { %610 = shalt.err (!%p607_p8)
}
 0x1c4   : > { %496 = dma.vmem_to_hbm [thread:$0]  (%p741_p9), %s791_s7, 256, %s387_s11, %s373_s18  }
 0x1c5 PF: > { %s401_s5 = sand.u32 1, %s645_s12   ;;  %p845_p11 = scmp.ne.s32.totalorder %s843_s27, 0 }
 0x1c6   : > { %p846_p12 = scmp.ge.s32.totalorder %s665_s17, 2  ;;  %s402_s6 = scalar_lea.sflag [#allocation4], %s401_s5 }
 0x1c8   : > { %p503_p0 = pnand %p846_p12, %p845_p11 }
 0x1ca   : > { %p504_p1 = pneg %p503_p0 }
 0x1cc   : > { %640 = dma.done.wait (%p504_p1), %s402_s6, 256  }
 0x1cd   : > { %642 = vsyncadd (%p504_p1), %s402_s6, 4294967040  ;;  %s19_s17 = sadd.s32 1, %s665_s17   ;;  %s847_s12 = smov %s649_s13 }
 0x1ce   : > { %p16_p2 = scmp.ge.s32.totalorder %s19_s17, 4   ;;  %s848_s13 = smov %s653_s14 }
 0x1cf   : > { %s849_s14 = smov %s746_s26  ;;  %s850_s15 = smov %s661_s16 }
 0x1d0   : > { %s851_s16 = smov %s853_s20  ;;  %18 = sbr.rel (!%p16_p2) target bundleno = 6 (0x6), region = 77 }
 0x1d5   :  { %407 = vsyncpa [#allocation3], 1 }
 0x1d6   :  { %409 = vsyncpa [#allocation3 + $0x1], 1 }
 0x1d7   :  { %410 = vsyncpa [#allocation4], 1 }
 0x1d8   :  { %412 = vsyncpa [#allocation4 + $0x1], 1 }

</bundles_post_ra>
